<compile_context>
chip_gen: v7x
topology: tpu7x:2x2x1
jax: 0.10.0
libtpu: 0.0.40
codegen_flags: <defaults>
</compile_context>

<pallas_src>
import functools

import jax
import jax.numpy as jnp
from jax.experimental import pallas as pl
from jax.experimental.pallas import tpu as pltpu


# --------------------------------------------------------------------------- #
# Kernels
# --------------------------------------------------------------------------- #
def _conv1x1_bn_kernel(w_ref, x_ref, b_ref, o_ref):
    """Single C_in chunk: o = W @ x + bias for one (C_out, tw) tile."""
    acc = jnp.dot(w_ref[...], x_ref[...], preferred_element_type=jnp.float32)
    o_ref[...] = (acc + b_ref[...]).astype(o_ref.dtype)


def _conv1x1_bn_kernel_ktiled(w_ref, x_ref, b_ref, o_ref, acc_ref):
    """C_in split over grid axis 2 ("arbitrary"): accumulate in f32 scratch."""
    k = pl.program_id(2)

    @pl.when(k == 0)
    def _():
        acc_ref[...] = jnp.zeros_like(acc_ref)

    acc_ref[...] += jnp.dot(w_ref[...], x_ref[...],
                            preferred_element_type=jnp.float32)

    @pl.when(k == pl.num_programs(2) - 1)
    def _():
        o_ref[...] = (acc_ref[...] + b_ref[...]).astype(o_ref.dtype)


# --------------------------------------------------------------------------- #
# Generation-aware VMEM / tile planning (all trace-time Python)
# --------------------------------------------------------------------------- #
def _round_up(x, m):
    return (x + m - 1) // m * m


@functools.lru_cache(maxsize=None)
def _tpu_vmem_bytes():
    """Physical VMEM per core, or None if it cannot be determined."""
    try:
        info = pltpu.get_tpu_info()
        cap = getattr(info, "vmem_capacity_bytes", None)
        if cap:
            return int(cap)
    except Exception:
        pass
    try:
        kind = jax.devices()[0].device_kind.lower()
    except Exception:
        return None
    if "v7" in kind:
        return 64 * 2**20
    if any(g in kind for g in ("v4", "v5", "v6")):
        return 128 * 2**20
    if any(g in kind for g in ("v2", "v3")):
        return 16 * 2**20
    return None


def _vmem_plan():
    """Returns (vmem_limit_bytes | None, tile-planning budget, lane-tile cap)."""
    phys = _tpu_vmem_bytes()
    if phys is None:
        return None, 12 * 2**20, 2048          # unknown: conservative defaults
    if phys >= 96 * 2**20:                     # v4/v5e/v5p/v6e: 128 MiB VMEM
        return 96 * 2**20, 56 * 2**20, 8192
    if phys >= 48 * 2**20:                     # v7x: 64 MiB physical VMEM
        return 48 * 2**20, 28 * 2**20, 4096
    return None, 8 * 2**20, 2048               # small-VMEM parts (v2/v3)


def _plan_tiles(c_in, c_out, hw, bpe, budget, cap):
    """Pick (tw, tk): HW lane-tile width and C_in reduction chunk size."""
    if hw < 128:
        # Sub-128 spatial maps: single full-extent (lane-masked) block.
        # TODO(synk): a channels-last (lanes = C_out) layout would make these
        # stores lane-dense, but that is a model-level layout decision.
        return hw, c_in

    def fits(tw, tk):
        nk = c_in // tk
        w_bufs = 1 if nk == 1 else 2           # invariant weight is single-buffered
        need = (w_bufs * c_out * tk * bpe      # weight block(s)
                + c_out * 4                    # f32 bias column
                + 2 * tk * tw * bpe            # double-buffered x tile
                + 2 * c_out * tw * bpe)        # double-buffered out tile
        if nk > 1:
            need += c_out * tw * 4             # f32 accumulator scratch
        return need <= budget

    tw_max = min(cap, _round_up(hw, 128))
    # 1) Largest lane tile that fits with all of C_in as one reduction chunk.
    tw = tw_max
    while tw > 128 and not fits(tw, c_in):
        tw -= 128
    if fits(tw, c_in) and (tw >= 512 or tw == tw_max):
        return tw, c_in
    # 2) Lane tile got forced narrow: split C_in over a reduction grid axis
    #    (equal 128-multiple chunks keep the ragged-K reduction exact) and keep
    #    the lane tile at >=512, the measured HBM-bandwidth knee.
    if c_in > 128 and c_in % 128 == 0:
        tw_target = min(512, tw_max)
        m = c_in // 128
        for parts in range(2, m + 1):
            if m % parts == 0 and fits(tw_target, c_in // parts):
                return tw_target, c_in // parts
    # 3) Fall back to the narrow tile with the whole C_in.
    # TODO(synk): for extreme C_out the weight block alone can exceed the
    # budget; tiling C_out as an extra parallel grid axis would cover that.
    return max(tw, 128), c_in


# --------------------------------------------------------------------------- #
# Wrapper
# --------------------------------------------------------------------------- #
@functools.partial(jax.jit,
                   static_argnames=("stride", "bn", "eps", "compute_dtype",
                                    "_force_plan"))
def conv1x1_linear(x, weight, gamma, beta, running_mean, running_var, *,
                   stride=1, bn=True, eps=1e-5, compute_dtype=None,
                   _force_plan=None):
    """Equivalent of Conv1x1Linear.forward (1x1 conv, no bias, BN eval mode).

    x:      (N, C_in, H, W)   NCHW, like PyTorch
    weight: (C_out, C_in, 1, 1)
    gamma, beta, running_mean, running_var: (C_out,)
    compute_dtype: optional MXU / HBM-stream dtype (e.g. jnp.bfloat16 on
        v5e/v6e/v7x when accuracy allows); None keeps the input dtype.
    """
    if stride > 1:
        # TODO(synk): fold the stride subsampling into the kernel (per-row
        # blocks via index_map + strided in-kernel W reads) to drop this extra
        # XLA pass. OSNet only instantiates Conv1x1Linear with stride=1, so the
        # hot path never takes this branch.
        x = x[:, :, ::stride, ::stride]

    N, C_in, H, W = x.shape
    C_out = weight.shape[0]
    out_dtype = x.dtype
    cdt = jnp.dtype(out_dtype) if compute_dtype is None else jnp.dtype(compute_dtype)
    bpe = max(cdt.itemsize, jnp.dtype(out_dtype).itemsize)   # planning itemsize

    # Fold eval-mode BN into the conv weight and a per-channel f32 bias column.
    w2 = weight.reshape(C_out, C_in).astype(jnp.float32)
    if bn:
        inv_std = jax.lax.rsqrt(running_var.astype(jnp.float32) + eps)
        scale = gamma.astype(jnp.float32) * inv_std
        bias = beta.astype(jnp.float32) - running_mean.astype(jnp.float32) * scale
        w2 = w2 * scale[:, None]
    else:
        bias = jnp.zeros((C_out,), jnp.float32)
    w2 = w2.astype(cdt)                 # matmul operand dtype
    bias = bias.reshape(C_out, 1)       # f32, added after the f32 accumulation

    # NCHW -> (N, C_in, H*W): trailing-dim collapse, no transpose / no copy.
    HW = H * W
    x3 = x.reshape(N, C_in, HW)
    if cdt != x.dtype:
        x3 = x3.astype(cdt)

    vmem_limit, budget, cap = _vmem_plan()
    if _force_plan is not None:
        tw, tk = _force_plan
    else:
        tw, tk = _plan_tiles(C_in, C_out, HW, bpe, budget, cap)
        # v7x has 2 TensorCores: make sure the parallel axes expose >= 2 programs.
        while N * pl.cdiv(HW, tw) < 2 and tw > 128:
            tw = max(128, _round_up(tw // 2, 128))
    if C_in % tk != 0:                  # reduction chunks must tile C_in exactly
        tk = C_in
    nk = C_in // tk
    n_hw = pl.cdiv(HW, tw)

    cost = pl.CostEstimate(
        flops=2 * N * HW * C_in * C_out,
        transcendentals=0,
        bytes_accessed=(N * HW * C_in * cdt.itemsize
                        + N * HW * C_out * jnp.dtype(out_dtype).itemsize
                        + C_in * C_out * cdt.itemsize + C_out * 4),
    )

    if nk == 1:
        # Grid-invariant weight/bias blocks are single-buffered so the VMEM they
        # would have double-buffered goes to wider, lane-dense x / out tiles.
        grid = (N, n_hw)
        in_specs = [
            pl.BlockSpec((C_out, C_in), lambda n, j: (0, 0),
                         pipeline_mode=pl.Buffered(1)),
            pl.BlockSpec((None, C_in, tw), lambda n, j: (n, 0, j)),
            pl.BlockSpec((C_out, 1), lambda n, j: (0, 0),
                         pipeline_mode=pl.Buffered(1)),
        ]
        out_specs = pl.BlockSpec((None, C_out, tw), lambda n, j: (n, 0, j))
        kernel = _conv1x1_bn_kernel
        scratch = []
        dims = ("parallel", "parallel")
    else:
        # Large C_in: split the reduction over an "arbitrary" grid axis with an
        # f32 VMEM accumulator instead of narrowing the HW lane tile.
        grid = (N, n_hw, nk)
        in_specs = [
            pl.BlockSpec((C_out, tk), lambda n, j, k: (0, k)),
            pl.BlockSpec((None, tk, tw), lambda n, j, k: (n, k, j)),
            pl.BlockSpec((C_out, 1), lambda n, j, k: (0, 0),
                         pipeline_mode=pl.Buffered(1)),
        ]
        out_specs = pl.BlockSpec((None, C_out, tw), lambda n, j, k: (n, 0, j))
        kernel = _conv1x1_bn_kernel_ktiled
        scratch = [pltpu.VMEM((C_out, tw), jnp.float32)]
        dims = ("parallel", "parallel", "arbitrary")

    # Ragged HW (HW % tw != 0) is handled by Pallas block masking: OOB x columns
    # feed only OOB (masked) output columns -- nothing reduces across HW.
    out3 = pl.pallas_call(
        kernel,
        out_shape=jax.ShapeDtypeStruct((N, C_out, HW), out_dtype),
        grid_spec=pltpu.PrefetchScalarGridSpec(
            num_scalar_prefetch=0,
            grid=grid,
            in_specs=in_specs,
            out_specs=out_specs,
            scratch_shapes=scratch,
        ),
        compiler_params=pltpu.CompilerParams(
            dimension_semantics=dims,
            vmem_limit_bytes=vmem_limit,
        ),
        cost_estimate=cost,
    )(w2, x3, bias)

    return out3.reshape(N, C_out, H, W)


# --------------------------------------------------------------------------- #
# Pure-JAX reference + self-test
# --------------------------------------------------------------------------- #
def _reference(x, weight, gamma, beta, running_mean, running_var, eps=1e-5):
    """1x1 conv (NCHW, no bias) + eval-mode BatchNorm2d."""
    c_out, c_in = weight.shape[0], weight.shape[1]
    y = jnp.einsum('nchw,oc->nohw', x.astype(jnp.float32),
                   weight.reshape(c_out, c_in).astype(jnp.float32))
    inv_std = 1.0 / jnp.sqrt(running_var + eps)
    scale = (gamma * inv_std)[None, :, None, None]
    bias = (beta - running_mean * gamma * inv_std)[None, :, None, None]
    return y * scale + bias


if __name__ == "__main__":
    key = jax.random.PRNGKey(0)
    k_x, k_w, k_g, k_b, k_m, k_v = jax.random.split(key, 6)

    # --- primary check: default (single C_in chunk) path -------------------- #
    N, C_in, H, W = 2, 4, 16, 16
    C_out = 8

    x = jax.random.normal(k_x, (N, C_in, H, W), jnp.float32)
    weight = jax.random.normal(k_w, (C_out, C_in, 1, 1), jnp.float32) * 0.1
    gamma = 1.0 + 0.1 * jax.random.normal(k_g, (C_out,), jnp.float32)
    beta = 0.1 * jax.random.normal(k_b, (C_out,), jnp.float32)
    running_mean = 0.05 * jax.random.normal(k_m, (C_out,), jnp.float32)
    running_var = jnp.abs(1.0 + 0.1 * jax.random.normal(k_v, (C_out,), jnp.float32))

    out = conv1x1_linear(x, weight, gamma, beta, running_mean, running_var,
                         stride=1, bn=True)
    out = jax.block_until_ready(out)
    ref = _reference(x, weight, gamma, beta, running_mean, running_var)
    assert out.shape == (N, C_out, H, W), out.shape
    assert jnp.allclose(out, ref, atol=1e-4, rtol=1e-4), \
        float(jnp.max(jnp.abs(out - ref)))

    # --- secondary check: force the K-tiled accumulator path ---------------- #
    C_in2, C_out2 = 256, 8
    x2 = 0.1 * jax.random.normal(k_x, (N, C_in2, H, W), jnp.float32)
    w2t = 0.05 * jax.random.normal(k_w, (C_out2, C_in2, 1, 1), jnp.float32)
    out2 = conv1x1_linear(x2, w2t, gamma, beta, running_mean, running_var,
                          stride=1, bn=True, _force_plan=(128, 128))
    out2 = jax.block_until_ready(out2)
    ref2 = _reference(x2, w2t, gamma, beta, running_mean, running_var)
    assert out2.shape == (N, C_out2, H, W), out2.shape
    assert jnp.allclose(out2, ref2, atol=1e-3, rtol=1e-3), \
        float(jnp.max(jnp.abs(out2 - ref2)))

    print("KERNEL_OK")
</pallas_src>

<mosaic_0001>
module attributes {stable_mosaic.version = 11 : i64} {
  func.func @_conv1x1_bn_kernel(%arg0: i32, %arg1: i32, %arg2: memref<8x4xf32, #tpu.memory_space<vmem>>, %arg3: memref<1x4x256xf32, #tpu.memory_space<vmem>>, %arg4: memref<8x1xf32, #tpu.memory_space<vmem>>, %arg5: memref<1x8x256xf32, #tpu.memory_space<vmem>>) attributes {dimension_semantics = [#tpu.dimension_semantics<parallel>, #tpu.dimension_semantics<parallel>], iteration_bounds = array<i64: 2, 1>, scalar_prefetch = 0 : i64, scratch_operands = 0 : i64, tpu.core_type = #tpu.core_type<tc>, window_params = [{pipeline_mode = #tpu.pipeline_mode<synchronous>, transform_indices = @transform_0, window_bounds = array<i64: 8, 4>}, {transform_indices = @transform_1, window_bounds = array<i64: 1, 4, 256>}, {pipeline_mode = #tpu.pipeline_mode<synchronous>, transform_indices = @transform_2, window_bounds = array<i64: 8, 1>}, {transform_indices = @transform_3, window_bounds = array<i64: 1, 8, 256>}]} {
    %c0 = arith.constant 0 : index
    %c0_0 = arith.constant 0 : index
    %0 = vector.load %arg2[%c0, %c0_0] : memref<8x4xf32, #tpu.memory_space<vmem>>, vector<8x4xf32>
    %c0_1 = arith.constant 0 : index
    %c0_2 = arith.constant 0 : index
    %c0_3 = arith.constant 0 : index
    %1 = vector.load %arg3[%c0_1, %c0_2, %c0_3] : memref<1x4x256xf32, #tpu.memory_space<vmem>>, vector<1x4x256xf32>
    %2 = vector.shape_cast %1 : vector<1x4x256xf32> to vector<4x256xf32>
    %cst = arith.constant dense<0.000000e+00> : vector<8x256xf32>
    %3 = tpu.matmul %0, %2, %cst {dimension_numbers = #tpu.dot_dimension_numbers<[1], [0], [0], [1], [0, 0, 1, 1], [], []>} : vector<8x4xf32>, vector<4x256xf32>, vector<8x256xf32> -> vector<8x256xf32>
    %c0_4 = arith.constant 0 : index
    %c0_5 = arith.constant 0 : index
    %4 = vector.load %arg4[%c0_4, %c0_5] : memref<8x1xf32, #tpu.memory_space<vmem>>, vector<8x1xf32>
    %5 = vector.broadcast %4 : vector<8x1xf32> to vector<8x256xf32>
    %6 = arith.addf %3, %5 : vector<8x256xf32>
    %c0_6 = arith.constant 0 : index
    %c0_7 = arith.constant 0 : index
    %c0_8 = arith.constant 0 : index
    %7 = vector.load %arg5[%c0_6, %c0_7, %c0_8] : memref<1x8x256xf32, #tpu.memory_space<vmem>>, vector<1x8x256xf32>
    %8 = vector.shape_cast %7 : vector<1x8x256xf32> to vector<8x256xf32>
    %9 = vector.shape_cast %6 : vector<8x256xf32> to vector<1x8x256xf32>
    tpu.vector_store %arg5[%c0_6, %c0_7, %c0_8], %9 {strides = array<i32>} : memref<1x8x256xf32, #tpu.memory_space<vmem>>, vector<1x8x256xf32>,
    return
  }
  func.func @transform_0(%arg0: i32, %arg1: i32) -> (i32, i32) {
    %c0_i32 = arith.constant 0 : i32
    %c0_i32_0 = arith.constant 0 : i32
    %c0_i32_1 = arith.constant 0 : i32
    return %c0_i32, %c0_i32_0 : i32, i32
  }
  func.func @transform_1(%arg0: i32, %arg1: i32) -> (i32, i32, i32) {
    %c0_i32 = arith.constant 0 : i32
    %c0_i32_0 = arith.constant 0 : i32
    return %arg0, %c0_i32, %arg1 : i32, i32, i32
  }
  func.func @transform_2(%arg0: i32, %arg1: i32) -> (i32, i32) {
    %c0_i32 = arith.constant 0 : i32
    %c0_i32_0 = arith.constant 0 : i32
    %c0_i32_1 = arith.constant 0 : i32
    return %c0_i32, %c0_i32_0 : i32, i32
  }
  func.func @transform_3(%arg0: i32, %arg1: i32) -> (i32, i32, i32) {
    %c0_i32 = arith.constant 0 : i32
    %c0_i32_0 = arith.constant 0 : i32
    return %arg0, %c0_i32, %arg1 : i32, i32, i32
  }
}

</mosaic_0001>

<bundles_post_ra>
// kernel: conv1x1_linear.1
= control target key start
LH: loop header
LB: loop body
LE: loop exit
PB: predicated region body
PF: predicated region fallthrough
CT: control target
= control target key end

     0   :  { %s479_s12 = smov 0   ;;  %s481_s13 = smov 0   ;;  %s518_s0 = inlined_call_operand.vmem [shape: f32[8,4], index: 0, kind: input, shape index: {}]   ;;  %s519_s1 = inlined_call_operand.vmem [shape: f32[2,4,256], index: 1, kind: input, shape index: {}]   ;;  %s520_s2 = inlined_call_operand.vmem [shape: f32[8,1], index: 2, kind: input, shape index: {}]   ;;  %s521_s3 = inlined_call_operand.vmem [shape: f32[2,8,256], index: 3, kind: output, shape index: {}]  }
   0x1   :  { %s483_s14 = smov 0  }
   0x2 LB: > { %s25_s15 = sadd.s32 1, %s451_s13  ;;  %p393_p0 = scmp.ge.s32.totalorder %s455_s14, 1  ;;  %s455_s14 = sphi %s483_s14, %s13_s14   ;;  %s451_s13 = sphi %s481_s13, %s523_s13   ;;  %s447_s12 = sphi %s479_s12, %s522_s12  }
   0x3   : > { %p27_p1 = scmp.ge.s32.totalorder %s25_s15, 2  ;;  %p158_p2 = scmp.lt.s32.totalorder %s455_s14, 3 }
   0x5   : > { %s525_s15 = smov (%p27_p1, %s25_s15), 0  ;;  %p159_p3 = pnand %p393_p0, %p158_p2 }
   0x6   : > { %p191_p4 = scmp.lt.s32.totalorder (!%p159_p3), %s447_s12, 1  ;;  %v457_v0 = vmov (!%p159_p3), 0.0   ;;  %v458_v1 = vmov (!%p159_p3), 0   ;;  %v212_v2 = vld [vmem:[%s520_s2] sm:$0xff] (!%p159_p3)  ;;  %vm224_vm0 = vcmask (!%p159_p3), 1043456   ;;  %vm220_vm1 = vcmask (!%p159_p3), 31744  }
   0x7   : > { %162 = sbr.rel (%p159_p3) target bundleno = 238 (0xee), region = 32  ;;  %293 = vmatprep.mubr.f32.mxu0 (!%p159_p3), %v457_v0  ;;  %431 = vset.pattern.permute.xlu0 (!%p159_p3), %v458_v1  ;;  %v210_v5 = vld [vmem:[%s518_s0] sm:$0xff] (!%p159_p3) }
   0x8   : > { %215 = vperm.xlu0 (!%p159_p3), %431, %v212_v2  }
   0xe   : > { %s527_s12 = smov (!%p191_p4, %s447_s12), 1 }
   0xf   : > { %s403_s18 = sshll.u32 %s527_s12, 3  ;;  %s404_s24 = sshll.u32 %s527_s12, 4 }
  0x10   : > { %s198_s21 = scalar_lea.vmem %s519_s1, %s403_s18  ;;  %s208_s27 = scalar_lea.vmem %s521_s3, %s404_s24 }
  0x11   : > { %v211_v3 = vld [vmem:[%s198_s21] sm:$0xff] }
  0x12   : > { %v219_v4 = vcombine.high %v211_v3, %v211_v3 }
  0x14   : > { %398 = vmatprep.subr.msk.mxu0 %vm224_vm0, %v219_v4 }
  0x15   : > { %399 = vmatpush1.msk.msra.mxu0 %vm224_vm0, %v211_v3 }
  0x16   : > { %400 = vmatmul.mubr.msk.f32.vlgmr.msra.gmra.mrb[0].mxu0 %vm220_vm1, %v210_v5 }
  0x87   : > { %v216_v6 = vpop.permute.xlu0 %215 }
  0xe9   : > { %v295_v7 = vpop.f32.mrb[0].mxu0 }
  0xea   : > { %v296_v8 = vadd.f32 %v295_v7, %v216_v6  ;;  %v297_v9 = vpop.f32.mrb[1].mxu0 }
  0xeb   : > { %v298_v10 = vadd.f32 %v297_v9, %v216_v6 }
  0xec   : > { %300 = vst [vmem:[%s208_s27] sm:$0xff] %v296_v8 }
  0xed   : > { %301 = vst [vmem:[%s208_s27 + $0x8] sm:$0xff] %v298_v10 }
  0xee PF: > { %s13_s14 = sadd.s32 1, %s455_s14   ;;  %s522_s12 = smov %s451_s13 }
  0xef   : > { %p10_p5 = scmp.ge.s32.totalorder %s13_s14, 4   ;;  %s523_s13 = smov %s525_s15 }
  0xf1   :  { %12 = sbr.rel (!%p10_p5) target bundleno = 2 (0x2), region = 62 }

</bundles_post_ra>
